<compile_context>
chip_gen: v7x
topology: tpu7x:2x2x1
jax: 0.10.0
libtpu: 0.0.40
codegen_flags: <defaults>
</compile_context>

<pallas_src>
import jax
import jax.numpy as jnp
from jax import lax
from jax.experimental import pallas as pl
from jax.experimental.pallas import tpu as pltpu

NUM_CLASSES = 9

_DEFAULT_TILE_N = 131072   # batch columns per grid step (lane axis); clamped to the batch
_DEFAULT_NUM_SPLITS = 2    # leading axis; 2-TC sharding candidate on v7x, harmless on 1-TC


def _class_balanced_weights(class_counts, beta):
    class_counts = jnp.asarray(class_counts, dtype=jnp.float32)
    effective_num = 1.0 - jnp.power(jnp.float32(beta), class_counts)
    weights = (1.0 - beta) / effective_num
    return weights / jnp.sum(weights) * class_counts.shape[0]


def _make_kernel(gamma, rem, num_splits, tiles_per_split):
    """gamma, ragged remainder and grid shape are baked in statically."""
    gamma = float(gamma)
    gamma_is_int = (gamma == round(gamma)) and gamma >= 0.0

    def tile_focal(logits_ref, targets_ref, weights_ref, mask_cols):
        """Per-lane focal contributions for one (C, tile_n) tile -> (1, tile_n) f32."""
        logits = logits_ref[...].astype(jnp.float32)    # (C, tn), bf16 upcast in-VMEM
        targets = targets_ref[...]                      # (1, tn) i32
        weights = weights_ref[...]                      # (C, 1) f32
        c, tn = logits.shape

        valid = None
        if mask_cols is not None:
            # Ragged boundary tile: neutralize garbage columns BEFORE exp/log.
            col_ids = lax.broadcasted_iota(jnp.int32, (1, tn), 1)
            valid = col_ids < mask_cols                 # (1, tn) bool, mask_cols static
            logits = jnp.where(valid, logits, 0.0)
            targets = jnp.where(valid, targets, 0)

        # Numerically-stable log-sum-exp over the class (sublane) axis.
        m = jnp.max(logits, axis=0, keepdims=True)                        # (1, tn)
        shifted = logits - m                                              # (C, tn)
        lse = jnp.log(jnp.sum(jnp.exp(shifted), axis=0, keepdims=True))   # (1, tn)

        # Fused one-hot gathers; algebraic fold:
        #   ce = -w[t] * (shifted[t] - lse) = w_t * (lse - s_t)
        row_ids = lax.broadcasted_iota(jnp.int32, (c, tn), 0)
        onehot = (row_ids == targets).astype(jnp.float32)                 # (C, tn)
        w_t = jnp.sum(onehot * weights, axis=0, keepdims=True)            # (1, tn)
        s_t = jnp.sum(onehot * shifted, axis=0, keepdims=True)            # (1, tn)
        ce = w_t * (lse - s_t)                                            # (1, tn)

        pt = jnp.exp(-ce)
        omp = 1.0 - pt
        if gamma_is_int:
            g = int(round(gamma))
            if g == 0:
                mod = jnp.ones_like(omp)
            else:
                mod = omp
                for _ in range(g - 1):       # plain VPU multiplies, exact at omp == 0
                    mod = mod * omp
        else:
            safe = jnp.maximum(omp, jnp.float32(1e-30))
            mod = jnp.where(omp > 0.0,
                            jnp.exp(jnp.float32(gamma) * jnp.log(safe)),
                            jnp.zeros_like(omp))

        focal = mod * ce                                                  # (1, tn)
        if valid is not None:
            focal = jnp.where(valid, focal, 0.0)      # zero out padded columns' contribution
        return focal

    def kernel(logits_ref, targets_ref, weights_ref, out_ref):
        split = pl.program_id(0)   # outer (parallel / core-parallel) axis
        step = pl.program_id(1)    # inner "arbitrary" reduction axis over batch tiles

        @pl.when(step == 0)
        def _():
            out_ref[...] = jnp.zeros_like(out_ref)     # lane-parallel accumulator init

        if rem == 0:
            focal = tile_focal(logits_ref, targets_ref, weights_ref, None)
            out_ref[...] += jnp.expand_dims(focal, 0)
        else:
            is_ragged = jnp.logical_and(split == num_splits - 1,
                                        step == tiles_per_split - 1)

            @pl.when(jnp.logical_not(is_ragged))
            def _():
                focal = tile_focal(logits_ref, targets_ref, weights_ref, None)
                out_ref[...] += jnp.expand_dims(focal, 0)

            @pl.when(is_ragged)
            def _():
                focal = tile_focal(logits_ref, targets_ref, weights_ref, rem)
                out_ref[...] += jnp.expand_dims(focal, 0)

    return kernel


def class_balanced_focal_loss_cn(logits_cn, targets, class_counts, beta, gamma, *,
                                 tile_n=_DEFAULT_TILE_N,
                                 num_splits=_DEFAULT_NUM_SPLITS,
                                 core_parallel=False):
    """Class-balanced focal loss from lane-dense (C, N) logits (no relayout copies).

    logits_cn: (C, N) float32 or bfloat16.  targets: (N,) integer class ids.
    """
    c, n = logits_cn.shape
    weights_2d = _class_balanced_weights(class_counts, beta).astype(jnp.float32).reshape(c, 1)
    targets_2d = targets.astype(jnp.int32).reshape(1, n)

    # Tile / grid sizing: lane dim a multiple of 128, no wrapper-side padding.
    tile_n = max(128, min(pl.cdiv(int(tile_n), 128) * 128, pl.cdiv(n, 128) * 128))
    n_tiles = pl.cdiv(n, tile_n)
    num_splits = max(1, int(num_splits))
    if n_tiles % num_splits != 0:          # keep splits exactly balanced, else single split
        num_splits = 1
    tiles_per_split = n_tiles // num_splits
    rem = n % tile_n                       # valid columns in the single ragged boundary tile

    kernel = _make_kernel(float(gamma), rem, num_splits, tiles_per_split)

    # VMEM budget: double-buffered logits (C=9 padded to 16 sublanes) + targets and the
    # (1, tile_n) output accumulator (both sublane-padded to 8 rows).
    logit_bytes = jnp.dtype(logits_cn.dtype).itemsize
    est = 2 * tile_n * (16 * logit_bytes + 8 * 4 + 8 * 4)
    vmem_limit = int(min(max(32 << 20, est + (8 << 20)), 56 << 20))  # safe on 64 MiB v7x VMEM

    if core_parallel:                      # opt-in explicit 2-TC sharding (v7x)
        dim_sem = (pltpu.CORE_PARALLEL, pltpu.ARBITRARY)
    else:
        dim_sem = ("parallel", "arbitrary")

    cost = pl.CostEstimate(
        flops=int(12 * n * c),
        transcendentals=int(n * (c + 2)),
        bytes_accessed=int(n * (c * logit_bytes + 4) + num_splits * tile_n * 4),
    )

    partial = pl.pallas_call(
        kernel,
        out_shape=jax.ShapeDtypeStruct((num_splits, 1, tile_n), jnp.float32),
        grid_spec=pltpu.PrefetchScalarGridSpec(
            num_scalar_prefetch=0,
            grid=(num_splits, tiles_per_split),
            in_specs=[
                pl.BlockSpec((c, tile_n), lambda s, i: (0, s * tiles_per_split + i)),
                pl.BlockSpec((1, tile_n), lambda s, i: (0, s * tiles_per_split + i)),
                pl.BlockSpec((c, 1), lambda s, i: (0, 0)),
            ],
            out_specs=pl.BlockSpec((1, 1, tile_n), lambda s, i: (s, 0, 0)),
        ),
        compiler_params=pltpu.CompilerParams(
            dimension_semantics=dim_sem,
            vmem_limit_bytes=vmem_limit),
        cost_estimate=cost,
    )(logits_cn, targets_2d, weights_2d)

    # Padded / masked columns contributed exactly 0 -> plain sum over lanes, divide by true N.
    return jnp.sum(partial) / jnp.float32(n)


def class_balanced_focal_loss(logits, targets, class_counts, beta, gamma, **kwargs):
    """PyTorch-parity entry point: logits (N, C), targets (N,).

    Does exactly one transpose to the lane-dense (C, N) layout.  For peak performance,
    produce logits as (C, N) upstream and call class_balanced_focal_loss_cn directly.
    """
    return class_balanced_focal_loss_cn(jnp.transpose(logits), targets, class_counts,
                                        beta, gamma, **kwargs)


def _reference_loss(logits, targets, class_counts, beta, gamma):
    """Pure-JAX reference matching the PyTorch module, for validation."""
    weights = _class_balanced_weights(class_counts, beta)
    logp = jax.nn.log_softmax(logits.astype(jnp.float32), axis=-1)
    logp_t = jnp.take_along_axis(logp, targets[:, None].astype(jnp.int32), axis=-1)[:, 0]
    ce = -weights[targets] * logp_t
    pt = jnp.exp(-ce)
    return jnp.mean((1.0 - pt) ** gamma * ce)


if __name__ == "__main__":
    key = jax.random.PRNGKey(0)
    k1, k2, k3, k4 = jax.random.split(key, 4)

    beta, gamma = 0.999, 2.0
    class_counts = jnp.array([120, 80, 200, 50, 300, 90, 60, 150, 40], dtype=jnp.float32)

    # 1) Tiny single-tile batch through the (N, C) PyTorch-parity entry, f32 logits
    #    (exercises the partial boundary block + in-kernel masking).
    n1 = 8
    logits1 = jax.random.normal(k1, (n1, NUM_CLASSES), dtype=jnp.float32)
    targets1 = jax.random.randint(k2, (n1,), 0, NUM_CLASSES, dtype=jnp.int32)
    loss1 = jax.block_until_ready(
        class_balanced_focal_loss(logits1, targets1, class_counts, beta, gamma, tile_n=128))
    ref1 = jax.block_until_ready(_reference_loss(logits1, targets1, class_counts, beta, gamma))
    assert jnp.allclose(loss1, ref1, rtol=1e-5, atol=1e-5), (loss1, ref1)

    # 2) Multi-tile, 2 balanced splits, ragged tail, bf16 logits already in (C, N) layout
    #    (exercises accumulation, split combination, bf16 in-VMEM upcast, no wrapper copies).
    n2 = 500
    logits2_cn = jax.random.normal(
        k3, (NUM_CLASSES, n2), dtype=jnp.float32).astype(jnp.bfloat16)
    targets2 = jax.random.randint(k4, (n2,), 0, NUM_CLASSES, dtype=jnp.int32)
    loss2 = jax.block_until_ready(
        class_balanced_focal_loss_cn(logits2_cn, targets2, class_counts, beta, gamma,
                                     tile_n=128, num_splits=2))
    ref2 = jax.block_until_ready(
        _reference_loss(jnp.transpose(logits2_cn), targets2, class_counts, beta, gamma))
    assert jnp.allclose(loss2, ref2, rtol=1e-4, atol=1e-5), (loss2, ref2)

    print("KERNEL_OK")
</pallas_src>

<mosaic_0001>
module attributes {stable_mosaic.version = 11 : i64} {
  func.func @kernel(%arg0: i32, %arg1: i32, %arg2: memref<9x128xf32, #tpu.memory_space<vmem>>, %arg3: memref<1x128xi32, #tpu.memory_space<vmem>>, %arg4: memref<9x1xf32, #tpu.memory_space<vmem>>, %arg5: memref<1x1x128xf32, #tpu.memory_space<vmem>>) attributes {dimension_semantics = [#tpu.dimension_semantics<parallel>, #tpu.dimension_semantics<arbitrary>], iteration_bounds = array<i64: 1, 1>, scalar_prefetch = 0 : i64, scratch_operands = 0 : i64, tpu.core_type = #tpu.core_type<tc>, window_params = [{transform_indices = @transform_0, window_bounds = array<i64: 9, 128>}, {transform_indices = @transform_1, window_bounds = array<i64: 1, 128>}, {pipeline_mode = #tpu.pipeline_mode<synchronous>, transform_indices = @transform_2, window_bounds = array<i64: 9, 1>}, {transform_indices = @transform_3, window_bounds = array<i64: 1, 1, 128>}]} {
    %c0_i32 = arith.constant 0 : i32
    %0 = arith.cmpi eq, %arg1, %c0_i32 : i32
    %1 = arith.extui %0 : i1 to i32
    %c0_i32_0 = arith.constant 0 : i32
    %2 = arith.cmpi ne, %1, %c0_i32_0 : i32
    scf.if %2 {
      %cst = arith.constant 0.000000e+00 : f32
      %11 = vector.broadcast %cst : f32 to vector<1x1x128xf32>
      %c0 = arith.constant 0 : index
      %c0_5 = arith.constant 0 : index
      %c0_6 = arith.constant 0 : index
      %12 = vector.load %arg5[%c0, %c0_5, %c0_6] : memref<1x1x128xf32, #tpu.memory_space<vmem>>, vector<1x1x128xf32>
      tpu.vector_store %arg5[%c0, %c0_5, %c0_6], %11 {strides = array<i32>} : memref<1x1x128xf32, #tpu.memory_space<vmem>>, vector<1x1x128xf32>,
    } else {
    }
    %c0_i32_1 = arith.constant 0 : i32
    %3 = arith.cmpi eq, %arg0, %c0_i32_1 : i32
    %c0_i32_2 = arith.constant 0 : i32
    %4 = arith.cmpi eq, %arg1, %c0_i32_2 : i32
    %5 = arith.andi %3, %4 : i1
    %true = arith.constant true
    %6 = arith.xori %5, %true : i1
    %7 = arith.extui %6 : i1 to i32
    %c0_i32_3 = arith.constant 0 : i32
    %8 = arith.cmpi ne, %7, %c0_i32_3 : i32
    scf.if %8 {
      %c0 = arith.constant 0 : index
      %c0_5 = arith.constant 0 : index
      %11 = vector.load %arg2[%c0, %c0_5] : memref<9x128xf32, #tpu.memory_space<vmem>>, vector<9x128xf32>
      %c0_6 = arith.constant 0 : index
      %c0_7 = arith.constant 0 : index
      %12 = vector.load %arg3[%c0_6, %c0_7] : memref<1x128xi32, #tpu.memory_space<vmem>>, vector<1x128xi32>
      %c0_8 = arith.constant 0 : index
      %c0_9 = arith.constant 0 : index
      %13 = vector.load %arg4[%c0_8, %c0_9] : memref<9x1xf32, #tpu.memory_space<vmem>>, vector<9x1xf32>
      %cst = arith.constant dense<0xFF800000> : vector<128xf32>
      %14 = vector.multi_reduction <maximumf>, %11, %cst [0] : vector<9x128xf32> to vector<128xf32>
      %15 = vector.shape_cast %14 : vector<128xf32> to vector<1x128xf32>
      %16 = vector.broadcast %15 : vector<1x128xf32> to vector<9x128xf32>
      %17 = arith.subf %11, %16 : vector<9x128xf32>
      %18 = math.exp %17 : vector<9x128xf32>
      %cst_10 = arith.constant dense<0.000000e+00> : vector<128xf32>
      %19 = vector.multi_reduction <add>, %18, %cst_10 [0] : vector<9x128xf32> to vector<128xf32>
      %20 = vector.shape_cast %19 : vector<128xf32> to vector<1x128xf32>
      %21 = math.log %20 : vector<1x128xf32>
      %22 = tpu.iota {dimensions = array<i32: 0>} : vector<9x128xi32>
      %23 = vector.broadcast %12 : vector<1x128xi32> to vector<9x128xi32>
      %24 = arith.cmpi eq, %22, %23 : vector<9x128xi32>
      %25 = arith.extui %24 : vector<9x128xi1> to vector<9x128xi32>
      %26 = arith.sitofp %25 : vector<9x128xi32> to vector<9x128xf32>
      %27 = vector.broadcast %13 : vector<9x1xf32> to vector<9x128xf32>
      %28 = arith.mulf %26, %27 : vector<9x128xf32>
      %cst_11 = arith.constant dense<0.000000e+00> : vector<128xf32>
      %29 = vector.multi_reduction <add>, %28, %cst_11 [0] : vector<9x128xf32> to vector<128xf32>
      %30 = vector.shape_cast %29 : vector<128xf32> to vector<1x128xf32>
      %31 = arith.mulf %26, %17 : vector<9x128xf32>
      %cst_12 = arith.constant dense<0.000000e+00> : vector<128xf32>
      %32 = vector.multi_reduction <add>, %31, %cst_12 [0] : vector<9x128xf32> to vector<128xf32>
      %33 = vector.shape_cast %32 : vector<128xf32> to vector<1x128xf32>
      %34 = arith.subf %21, %33 : vector<1x128xf32>
      %35 = arith.mulf %30, %34 : vector<1x128xf32>
      %cst_13 = arith.constant 0.000000e+00 : f32
      %36 = vector.broadcast %cst_13 : f32 to vector<1x128xf32>
      %37 = arith.subf %36, %35 : vector<1x128xf32>
      %38 = math.exp %37 : vector<1x128xf32>
      %cst_14 = arith.constant 1.000000e+00 : f32
      %39 = vector.broadcast %cst_14 : f32 to vector<1x128xf32>
      %40 = arith.subf %39, %38 : vector<1x128xf32>
      %41 = arith.mulf %40, %40 : vector<1x128xf32>
      %42 = arith.mulf %41, %35 : vector<1x128xf32>
      %c0_15 = arith.constant 0 : index
      %c0_16 = arith.constant 0 : index
      %c0_17 = arith.constant 0 : index
      %43 = vector.load %arg5[%c0_15, %c0_16, %c0_17] : memref<1x1x128xf32, #tpu.memory_space<vmem>>, vector<1x1x128xf32>
      %44 = vector.shape_cast %42 : vector<1x128xf32> to vector<1x1x128xf32>
      %45 = arith.addf %43, %44 : vector<1x1x128xf32>
      %c0_18 = arith.constant 0 : index
      %c0_19 = arith.constant 0 : index
      %c0_20 = arith.constant 0 : index
      %46 = vector.load %arg5[%c0_18, %c0_19, %c0_20] : memref<1x1x128xf32, #tpu.memory_space<vmem>>, vector<1x1x128xf32>
      tpu.vector_store %arg5[%c0_18, %c0_19, %c0_20], %45 {strides = array<i32>} : memref<1x1x128xf32, #tpu.memory_space<vmem>>, vector<1x1x128xf32>,
    } else {
    }
    %9 = arith.extui %5 : i1 to i32
    %c0_i32_4 = arith.constant 0 : i32
    %10 = arith.cmpi ne, %9, %c0_i32_4 : i32
    scf.if %10 {
      %c0 = arith.constant 0 : index
      %c0_5 = arith.constant 0 : index
      %11 = vector.load %arg2[%c0, %c0_5] : memref<9x128xf32, #tpu.memory_space<vmem>>, vector<9x128xf32>
      %c0_6 = arith.constant 0 : index
      %c0_7 = arith.constant 0 : index
      %12 = vector.load %arg3[%c0_6, %c0_7] : memref<1x128xi32, #tpu.memory_space<vmem>>, vector<1x128xi32>
      %c0_8 = arith.constant 0 : index
      %c0_9 = arith.constant 0 : index
      %13 = vector.load %arg4[%c0_8, %c0_9] : memref<9x1xf32, #tpu.memory_space<vmem>>, vector<9x1xf32>
      %14 = tpu.iota {dimensions = array<i32: 1>} : vector<1x128xi32>
      %c8_i32 = arith.constant 8 : i32
      %15 = vector.broadcast %c8_i32 : i32 to vector<1x128xi32>
      %16 = arith.cmpi slt, %14, %15 : vector<1x128xi32>
      %cst = arith.constant 0.000000e+00 : f32
      %17 = vector.shape_cast %16 : vector<1x128xi1> to vector<1x128xi1>
      %18 = vector.broadcast %17 : vector<1x128xi1> to vector<9x128xi1>
      %19 = vector.broadcast %cst : f32 to vector<9x128xf32>
      %20 = arith.select %18, %11, %19 : vector<9x128xi1>, vector<9x128xf32>
      %c0_i32_10 = arith.constant 0 : i32
      %21 = vector.broadcast %c0_i32_10 : i32 to vector<1x128xi32>
      %22 = arith.select %16, %12, %21 : vector<1x128xi1>, vector<1x128xi32>
      %cst_11 = arith.constant dense<0xFF800000> : vector<128xf32>
      %23 = vector.multi_reduction <maximumf>, %20, %cst_11 [0] : vector<9x128xf32> to vector<128xf32>
      %24 = vector.shape_cast %23 : vector<128xf32> to vector<1x128xf32>
      %25 = vector.broadcast %24 : vector<1x128xf32> to vector<9x128xf32>
      %26 = arith.subf %20, %25 : vector<9x128xf32>
      %27 = math.exp %26 : vector<9x128xf32>
      %cst_12 = arith.constant dense<0.000000e+00> : vector<128xf32>
      %28 = vector.multi_reduction <add>, %27, %cst_12 [0] : vector<9x128xf32> to vector<128xf32>
      %29 = vector.shape_cast %28 : vector<128xf32> to vector<1x128xf32>
      %30 = math.log %29 : vector<1x128xf32>
      %31 = tpu.iota {dimensions = array<i32: 0>} : vector<9x128xi32>
      %32 = vector.broadcast %22 : vector<1x128xi32> to vector<9x128xi32>
      %33 = arith.cmpi eq, %31, %32 : vector<9x128xi32>
      %34 = arith.extui %33 : vector<9x128xi1> to vector<9x128xi32>
      %35 = arith.sitofp %34 : vector<9x128xi32> to vector<9x128xf32>
      %36 = vector.broadcast %13 : vector<9x1xf32> to vector<9x128xf32>
      %37 = arith.mulf %35, %36 : vector<9x128xf32>
      %cst_13 = arith.constant dense<0.000000e+00> : vector<128xf32>
      %38 = vector.multi_reduction <add>, %37, %cst_13 [0] : vector<9x128xf32> to vector<128xf32>
      %39 = vector.shape_cast %38 : vector<128xf32> to vector<1x128xf32>
      %40 = arith.mulf %35, %26 : vector<9x128xf32>
      %cst_14 = arith.constant dense<0.000000e+00> : vector<128xf32>
      %41 = vector.multi_reduction <add>, %40, %cst_14 [0] : vector<9x128xf32> to vector<128xf32>
      %42 = vector.shape_cast %41 : vector<128xf32> to vector<1x128xf32>
      %43 = arith.subf %30, %42 : vector<1x128xf32>
      %44 = arith.mulf %39, %43 : vector<1x128xf32>
      %cst_15 = arith.constant 0.000000e+00 : f32
      %45 = vector.broadcast %cst_15 : f32 to vector<1x128xf32>
      %46 = arith.subf %45, %44 : vector<1x128xf32>
      %47 = math.exp %46 : vector<1x128xf32>
      %cst_16 = arith.constant 1.000000e+00 : f32
      %48 = vector.broadcast %cst_16 : f32 to vector<1x128xf32>
      %49 = arith.subf %48, %47 : vector<1x128xf32>
      %50 = arith.mulf %49, %49 : vector<1x128xf32>
      %51 = arith.mulf %50, %44 : vector<1x128xf32>
      %cst_17 = arith.constant 0.000000e+00 : f32
      %52 = vector.broadcast %cst_17 : f32 to vector<1x128xf32>
      %53 = arith.select %16, %51, %52 : vector<1x128xi1>, vector<1x128xf32>
      %c0_18 = arith.constant 0 : index
      %c0_19 = arith.constant 0 : index
      %c0_20 = arith.constant 0 : index
      %54 = vector.load %arg5[%c0_18, %c0_19, %c0_20] : memref<1x1x128xf32, #tpu.memory_space<vmem>>, vector<1x1x128xf32>
      %55 = vector.shape_cast %53 : vector<1x128xf32> to vector<1x1x128xf32>
      %56 = arith.addf %54, %55 : vector<1x1x128xf32>
      %c0_21 = arith.constant 0 : index
      %c0_22 = arith.constant 0 : index
      %c0_23 = arith.constant 0 : index
      %57 = vector.load %arg5[%c0_21, %c0_22, %c0_23] : memref<1x1x128xf32, #tpu.memory_space<vmem>>, vector<1x1x128xf32>
      tpu.vector_store %arg5[%c0_21, %c0_22, %c0_23], %56 {strides = array<i32>} : memref<1x1x128xf32, #tpu.memory_space<vmem>>, vector<1x1x128xf32>,
    } else {
    }
    return
  }
  func.func @transform_0(%arg0: i32, %arg1: i32) -> (i32, i32) {
    %c1_i32 = arith.constant 1 : i32
    %0 = arith.muli %arg0, %c1_i32 : i32
    %1 = arith.addi %0, %arg1 : i32
    %c0_i32 = arith.constant 0 : i32
    %c0_i32_0 = arith.constant 0 : i32
    return %c0_i32, %1 : i32, i32
  }
  func.func @transform_1(%arg0: i32, %arg1: i32) -> (i32, i32) {
    %c1_i32 = arith.constant 1 : i32
    %0 = arith.muli %arg0, %c1_i32 : i32
    %1 = arith.addi %0, %arg1 : i32
    %c0_i32 = arith.constant 0 : i32
    %c0_i32_0 = arith.constant 0 : i32
    return %c0_i32, %1 : i32, i32
  }
  func.func @transform_2(%arg0: i32, %arg1: i32) -> (i32, i32) {
    %c0_i32 = arith.constant 0 : i32
    %c0_i32_0 = arith.constant 0 : i32
    %c0_i32_1 = arith.constant 0 : i32
    return %c0_i32, %c0_i32_0 : i32, i32
  }
  func.func @transform_3(%arg0: i32, %arg1: i32) -> (i32, i32, i32) {
    %c0_i32 = arith.constant 0 : i32
    %c0_i32_0 = arith.constant 0 : i32
    %c0_i32_1 = arith.constant 0 : i32
    return %arg0, %c0_i32, %c0_i32_0 : i32, i32, i32
  }
}

</mosaic_0001>

<bundles_post_ra>
// kernel: tpu_custom_call.1
= control target key start
LH: loop header
LB: loop body
LE: loop exit
PB: predicated region body
PF: predicated region fallthrough
CT: control target
= control target key end

     0   :  { %v300_v1 = vmov 0   ;;  %v301_v2 = vmov 0.0   ;;  %s365_s0 = inlined_call_operand.vmem [shape: f32[9,8], index: 0, kind: input, shape index: {}]   ;;  %s366_s1 = inlined_call_operand.vmem [shape: s32[1,8], index: 1, kind: input, shape index: {}]   ;;  %s367_s2 = inlined_call_operand.vmem [shape: f32[9,1], index: 2, kind: input, shape index: {}]   ;;  %s368_s3 = inlined_call_operand.hbm [shape: f32[1,1,128], index: 3, kind: output, shape index: {}]  }
   0x1   :  { %v60_v0 = vld [vmem:[%s367_s2 + $0x8] sm:$0x1]  ;;  %267 = vset.pattern.permute.xlu0 %v300_v1  ;;  %50 = vst [vmem:[#allocation2] sm:$0x1] %v301_v2 }
   0x2   :  { %114 = vperm.xlu0 %267, %v60_v0  }
   0x3   :  { %8 = vsyncpa [#allocation3], 0  ;;  %v59_v3 = vld [vmem:[%s367_s2] sm:$0xff]  ;;  %v61_v4 = vlaneseq  ;;  %v57_v6 = vld [vmem:[%s365_s0 + $0x8] sm:$0x1]  ;;  %vm69_vm1 = vcmask 1040384  }
   0x4   :  { %v56_v7 = vld [vmem:[%s365_s0] sm:$0xff] }
   0x5   :  { %v329_v5 = vand.u32 127, %v61_v4  ;;  %v95_v22 = vshrl.u32 %v61_v4, 7  ;;  %v58_v24 = vld [vmem:[%s366_s1] sm:$0x1]  ;;  %s302_s1 = smov [#allocation2]  }
   0x6   :  { %109 = vperm.xlu0 %267, %v59_v3   ;;  %s242_s20 = sshll.u32 %s302_s1, 4  ;;  %s243_s20 = int_to_ptr.vmem [resolvable:$true] %s242_s20 }
   0x7   :  { %vm63_vm0 = vcmp.lt.s32.totalorder %v329_v5, 8  ;;  %v99_v25 = vsub.s32 0, %v95_v22  ;;  %v96_v29 = vadd.s32 8, %v95_v22  ;;  %s276_s21 = scalar_lea.vmem %s243_s20, 16  ;;  %s280_s22 = scalar_lea.vmem %s243_s20, 32 }
   0x8   :  { %v67_v8 = vsel %vm63_vm0, %v57_v6, 0.0  ;;  %v66_v9 = vsel %vm63_vm0, %v56_v7, 0.0  ;;  %v68_v27 = vsel %vm63_vm0, %v58_v24, 0  ;;  %p277_p0 = scmp.ne.s32.totalorder %s243_s20, %s276_s21  ;;  %p281_p1 = scmp.lt.s32.totalorder %s243_s20, %s243_s20 }
   0x9   :  { %v70_v10 = vsel %vm69_vm1, %v67_v8, -inf  ;;  %v100_v30 = vrot.slane %v68_v27, %v99_v25  ;;  %p282_p2 = scmp.lt.s32.totalorder %s280_s22, %s276_s21 }
   0xa   :  { %v71_v11 = vmax.f32 %v66_v9, %v70_v10 }
   0xb   :  { %vm102_vm2 = vcmp.eq.s32.totalorder %v96_v29, %v100_v30  ;;  %vm101_vm3 = vcmp.eq.s32.totalorder %v95_v22, %v100_v30  ;;  %p283_p3 = por %p282_p2, %p281_p1 }
   0xc   :  { %v72_v12 = vrot.slane %v71_v11, 4  ;;  %v260_v33 = vsel %vm102_vm2, 1.0, %v301_v2  ;;  %v259_v36 = vsel %vm101_vm3, 1.0, %v301_v2 }
   0xd   :  { %p284_p4 = pnand %p283_p3, %p277_p0 }
   0xe   :  { %v73_v13 = vmax.f32 %v71_v11, %v72_v12 }
  0x10   :  { %v74_v14 = vrot.slane %v73_v13, 2 }
  0x12   :  { %v75_v15 = vmax.f32 %v73_v13, %v74_v14 }
  0x14   :  { %v76_v16 = vrot.slane %v75_v15, 1 }
  0x16   :  { %v77_v17 = vmax.f32 %v75_v15, %v76_v16 }
  0x18   :  { %v79_v18 = vsub.f32 %v67_v8, %v77_v17  ;;  %v78_v19 = vsub.f32 %v66_v9, %v77_v17  ;;  %v146_v9 = vld [vmem:[#allocation2] sm:$0x1] }
  0x1a   :  { %v82_v20 = vmul.f32 1.442695, %v79_v18  ;;  %v80_v21 = vmul.f32 1.442695, %v78_v19  ;;  %v128_v35 = vmul.f32 %v260_v33, %v79_v18  ;;  %v127_v38 = vmul.f32 %v259_v36, %v78_v19 }
  0x1c   :  { %268 = vpow2.f32 %v82_v20  ;;  %v129_v39 = vsel %vm69_vm1, %v128_v35, 0.0 }
  0x1d   :  { %270 = vpow2.f32 %v80_v21  ;;  %v130_v41 = vadd.f32 %v129_v39, %v127_v38 }
  0x1f   :  { %v131_v43 = vrot.slane %v130_v41, 4 }
  0x21   :  { %v132_v45 = vadd.f32 %v131_v43, %v130_v41 }
  0x23   :  { %v133_v47 = vrot.slane %v132_v45, 2 }
  0x25   :  { %v134_v51 = vadd.f32 %v133_v47, %v132_v45 }
  0x26   :  { %v269_v23 = vpop.eup %268 }
  0x27   :  { %v271_v26 = vpop.eup %270  ;;  %v84_v28 = vsel %vm69_vm1, %v269_v23, 0.0  ;;  %v135_v55 = vrot.slane %v134_v51, 1 }
  0x28   :  { %v85_v31 = vadd.f32 %v271_v26, %v84_v28 }
  0x29   :  { %v136_v59 = vadd.f32 %v135_v55, %v134_v51 }
  0x2a   :  { %v86_v32 = vrot.slane %v85_v31, 4 }
  0x2c   :  { %v87_v34 = vadd.f32 %v86_v32, %v85_v31 }
  0x2e   :  { %v88_v37 = vrot.slane %v87_v34, 2 }
  0x30   :  { %v89_v40 = vadd.f32 %v88_v37, %v87_v34 }
  0x32   :  { %v90_v42 = vrot.slane %v89_v40, 1 }
  0x34   :  { %v91_v44 = vadd.f32 %v90_v42, %v89_v40 }
  0x36   :  { %272 = vlog2.f32 %v91_v44 }
  0x40   :  { %v273_v56 = vpop.eup %272 }
  0x41   :  { %v93_v60 = vmul.f32 0.6931472, %v273_v56 }
  0x43   :  { %v137_v63 = vsub.f32 %v93_v60, %v136_v59 }
  0x81   :  { %v115_v46 = vpop.permute.xlu0 %114 }
  0x82   :  { %v118_v48 = vmul.f32 %v260_v33, %v115_v46 }
  0x84   :  { %v119_v52 = vsel %vm69_vm1, %v118_v48, 0.0 }
  0x85   :  { %v110_v49 = vpop.permute.xlu0 %109 }
  0x86   :  { %v117_v50 = vmul.f32 %v259_v36, %v110_v49 }
  0x88   :  { %v120_v53 = vadd.f32 %v119_v52, %v117_v50 }
  0x8a   :  { %v121_v54 = vrot.slane %v120_v53, 4 }
  0x8c   :  { %v122_v57 = vadd.f32 %v121_v54, %v120_v53 }
  0x8e   :  { %v123_v58 = vrot.slane %v122_v57, 2 }
  0x90   :  { %v124_v61 = vadd.f32 %v123_v58, %v122_v57 }
  0x92   :  { %v125_v62 = vrot.slane %v124_v61, 1 }
  0x94   :  { %v126_v0 = vadd.f32 %v125_v62, %v124_v61 }
  0x96   :  { %v138_v1 = vmul.f32 %v137_v63, %v126_v0 }
  0x98   :  { %v139_v2 = vsub.f32 0.0, %v138_v1 }
  0x9a   :  { %v140_v3 = vmul.f32 1.442695, %v139_v2 }
  0x9c   :  { %274 = vpow2.f32 %v140_v3 }
  0xa6   :  { %v275_v4 = vpop.eup %274 }
  0xa7   :  { %v142_v6 = vsub.f32 1.0, %v275_v4 }
  0xa9   :  { %v143_v7 = vmul.f32 %v142_v6, %v142_v6 }
  0xab   :  { %v144_v8 = vmul.f32 %v143_v7, %v138_v1 }
  0xad   :  { %v145_v10 = vsel %vm63_vm0, %v144_v8, 0.0 }
  0xae   :  { %v147_v11 = vadd.f32 %v146_v9, %v145_v10 }
  0xb0   :  { %148 = vst [vmem:[#allocation2] sm:$0x1] %v147_v11 }
  0xb1   :  { %287 = shalt.err (!%p284_p4)
}
  0xb2   :  { %s288_s25 = scalar_lea.hbm %s368_s3, 16 }
  0xb3   :  { %p289_p5 = scmp.ne.s32.totalorder %s368_s3, %s288_s25  ;;  %p292_p6 = scmp.lt.u32.totalorder %s288_s25, %s368_s3 }
  0xb5   :  { %p294_p7 = pnand %p292_p6, %p289_p5 }
  0xb7   :  { %297 = shalt.err (!%p294_p7)
}
  0xb8   :  { %245 = dma.vmem_to_hbm [thread:$0]  %s243_s20, 16, %s368_s3, [#allocation3]  }
  0xb9   :  { %298 = dma.done.wait [#allocation3], 16  }
  0xba   :  { %299 = vsyncadd [#allocation3], 4294967280 }
  0xbb   :  { %249 = vsyncpa [#allocation3], 1 }

</bundles_post_ra>
